<compile_context>
chip_gen: v7x
topology: tpu7x:2x2x1
jax: 0.10.0
libtpu: 0.0.40
codegen_flags: <defaults>
</compile_context>

<pallas_src>
import functools
import math

import jax
import jax.numpy as jnp
from jax import lax
from jax.experimental import pallas as pl
from jax.experimental.pallas import tpu as pltpu

POWER_ITERATIONS = 1
EPS = 1e-12
COMPUTE_DTYPE = jnp.bfloat16   # matmul input dtype (accumulation stays f32)


def _round_up(x, m):
    return (x + m - 1) // m * m


def _cdiv(a, b):
    return -(-a // b)


# ------------------------------------------------------------------------------
# Generation-aware VMEM budgets: v5e/v6e have 128 MiB per core, v7x 64 MiB per TC.
# ------------------------------------------------------------------------------
def _vmem_budgets():
    try:
        cap = int(pltpu.get_tpu_info().vmem_capacity_bytes)
    except Exception:
        cap = 64 * 1024 * 1024                      # conservative (v7x-sized) fallback
    limit = min(cap * 3 // 4, 96 * 1024 * 1024)     # 96 MiB on 128 MiB parts, 48 MiB on v7x
    tile_budget = limit // 4                        # ~24 MiB v5e/v6e, ~12 MiB v7x
    return limit, tile_budget


# --------------------------- Kernel A: power iteration ---------------------------
def _power_iter_kernel(w_ref, u_ref, v_ref, u_out_ref, v_out_ref, inv_sigma_ref):
    # w_ref: (C_out_pad, K_pad) f32 zero-padded; u_ref: (1, C_out_pad); v_ref: (1, K_pad).
    w = w_ref[...]
    u = u_ref[...]
    v = v_ref[...]
    for _ in range(POWER_ITERATIONS):
        # v = l2normalize(W^T u): contract u's dim 1 with w's dim 0 (no transpose).
        wt_u = lax.dot_general(u, w, (((1,), (0,)), ((), ())),
                               preferred_element_type=jnp.float32)        # (1, K_pad)
        v = wt_u * lax.rsqrt(jnp.sum(wt_u * wt_u) + EPS * EPS)
        # u = l2normalize(W v): contract on K of both operands (NT form).
        w_v = lax.dot_general(v, w, (((1,), (1,)), ((), ())),
                              preferred_element_type=jnp.float32)         # (1, C_out_pad)
        u = w_v * lax.rsqrt(jnp.sum(w_v * w_v) + EPS * EPS)
    # sigma = u . (W v); recomputed unconditionally so POWER_ITERATIONS == 0 also works.
    w_v = lax.dot_general(v, w, (((1,), (1,)), ((), ())),
                          preferred_element_type=jnp.float32)
    sigma = jnp.sum(u * w_v, keepdims=True)                               # (1, 1)
    inv_sigma_ref[...] = pl.reciprocal(sigma, approx=False)
    u_out_ref[...] = u
    v_out_ref[...] = v


# ---------------------- Kernel B: fused 3x3 conv (9 shifted matmuls) ----------------------
def _fused_conv3x3_kernel(inv_sigma_ref, x_ref, w_ref, b_ref, o_ref, *, img_w):
    # inv_sigma_ref: (1, 1) f32 in SMEM.
    # x_ref: (C_in, (tile_h + 2) * img_w + 2) bf16 row slab (1-row halo + 1-elem guards).
    # w_ref: (9, C_out_pad, C_in) bf16 tap weights (tap = di * 3 + dj).
    # b_ref: (C_out_pad, 1) f32.   o_ref: (C_out_pad, tile_h * img_w).
    c_out_p, s_out = o_ref.shape

    # Column index of every flattened output position: masks the two horizontal taps
    # that would otherwise wrap across row boundaries.
    col = lax.broadcasted_iota(jnp.int32, (1, s_out), 1) % img_w
    not_first_col = col != 0
    not_last_col = col != (img_w - 1)

    acc = jnp.zeros((c_out_p, s_out), jnp.float32)
    for di in range(3):
        for dj in range(3):
            # Output position s reads slab element s + di*img_w + dj (the +1 guard
            # offset is folded into the slab's leading pad element).
            off = di * img_w + dj
            xs = x_ref[:, pl.ds(off, s_out)]                     # (C_in, s_out) bf16
            if dj == 0:
                xs = jnp.where(not_first_col, xs, jnp.zeros_like(xs))
            elif dj == 2:
                xs = jnp.where(not_last_col, xs, jnp.zeros_like(xs))
            acc = acc + lax.dot_general(
                w_ref[di * 3 + dj], xs, (((1,), (0,)), ((), ())),
                preferred_element_type=jnp.float32)              # (C_out_pad, s_out)

    # conv(x, W) / sigma + b  ==  conv(x, W / sigma) + b
    o_ref[...] = (acc * inv_sigma_ref[0, 0] + b_ref[...]).astype(o_ref.dtype)


# --------------------------------- tiling helper ---------------------------------
def _pick_row_tiling(n_batch, h, w, c_in, c_out_pad, tile_budget_bytes):
    """Rows of the image per grid step.  Returns (n_tiles, tile_h, h_pad) with
    tile_h * w % 128 == 0 whenever n_tiles > 1 (lane-dense, unmasked stores)."""
    def tile_bytes(th):
        return (2 * c_in * ((th + 2) * w + 2) * 2      # double-buffered bf16 slab
                + 2 * c_out_pad * th * w * 4)          # double-buffered f32 output tile

    row_q = 128 // math.gcd(w, 128)                    # smallest tile_h with tile_h*w % 128 == 0
    n_rows_q = _cdiv(h, row_q)

    # Whole image in one tile (no halo duplication, no row padding) -- only when the
    # grid still has >= 2 parallel blocks (both v7x TensorCores busy) or cannot split.
    if tile_bytes(h) <= tile_budget_bytes and (n_batch > 1 or n_rows_q <= 1):
        return 1, h, h

    # Otherwise: smallest number of row tiles that fits the budget (>= 2 when the batch
    # alone cannot provide 2 parallel blocks), rebalanced so spatial padding waste stays
    # below one row quantum per tile (review fix for the hw_pad round-up blowup).
    n_tiles = 2 if n_batch == 1 else 1
    n_tiles = min(max(n_tiles, 1), n_rows_q)
    while (n_tiles < n_rows_q and
           tile_bytes(_cdiv(n_rows_q, n_tiles) * row_q) > tile_budget_bytes):
        n_tiles += 1
    tile_h = _cdiv(n_rows_q, n_tiles) * row_q
    if n_tiles == 1:
        tile_h = h                                     # full block: no 128-quantization needed
    return n_tiles, tile_h, n_tiles * tile_h


# ----------------------------------- forward -----------------------------------
def spectral_norm_conv_forward(x, w_bar, bias, u, v, out_dtype=jnp.float32):
    """SpectralNorm(Conv2d(C_in, C_out, 3, padding=1)).forward(x).

    x: (N, C_in, H, W) f32 NCHW; w_bar: (C_out, C_in, 3, 3); bias: (C_out,);
    u: (C_out,); v: (C_in*9,).  Returns (y NCHW, u_new, v_new)."""
    n, c_in, h, w = x.shape
    c_out = w_bar.shape[0]
    k = c_in * 9

    vmem_limit, tile_budget = _vmem_budgets()
    c_out_pad = _round_up(c_out, 8)
    k_pad = _round_up(k, 128)

    # ---- Kernel A: power iteration (u, v, 1/sigma only; W is never rescaled here) ----
    w_mat = jnp.pad(w_bar.reshape(c_out, k), ((0, c_out_pad - c_out), (0, k_pad - k)))
    u2 = jnp.pad(u.reshape(1, c_out), ((0, 0), (0, c_out_pad - c_out)))
    v2 = jnp.pad(v.reshape(1, k), ((0, 0), (0, k_pad - k)))

    vmem = pl.BlockSpec(memory_space=pltpu.MemorySpace.VMEM)
    u_new, v_new, inv_sigma = pl.pallas_call(
        _power_iter_kernel,
        out_shape=(jax.ShapeDtypeStruct((1, c_out_pad), jnp.float32),
                   jax.ShapeDtypeStruct((1, k_pad), jnp.float32),
                   jax.ShapeDtypeStruct((1, 1), jnp.float32)),
        in_specs=[vmem, vmem, vmem],
        out_specs=(vmem, vmem, vmem),
        compiler_params=pltpu.CompilerParams(vmem_limit_bytes=vmem_limit),
    )(w_mat, u2, v2)

    # ---- Kernel B: fused conv over bf16 row slabs ----
    fixed_bytes = 9 * c_out_pad * c_in * 2 + c_out_pad * 4       # resident weight + bias
    n_tiles, tile_h, h_pad = _pick_row_tiling(
        n, h, w, c_in, c_out_pad, max(tile_budget - fixed_bytes, 128 * 1024))
    s_slab = (tile_h + 2) * w + 2
    s_out = tile_h * w

    # Row slabs with a 1-row zero halo top/bottom (plus padding rows when h_pad > h)
    # and a 1-element zero guard at each end of the flattened lane axis.  Host-side
    # traffic ~(1 + 2/tile_h)x of the input -- vs ~9x+ for the old materialized im2col.
    x_b = x.astype(COMPUTE_DTYPE)
    x_rows = jnp.pad(x_b, ((0, 0), (0, 0), (1, h_pad - h + 1), (0, 0)))
    slabs = [x_rows[:, :, t * tile_h:t * tile_h + tile_h + 2, :] for t in range(n_tiles)]
    x_halo = jnp.stack(slabs, axis=1).reshape(n, n_tiles, c_in, (tile_h + 2) * w)
    x_halo = jnp.pad(x_halo, ((0, 0), (0, 0), (0, 0), (1, 1)))   # (n, n_tiles, c_in, s_slab)

    # Tap-major weights: w_taps[di*3 + dj, co, ci] = w_bar[co, ci, di, dj]  (tiny).
    w_taps = jnp.transpose(w_bar, (2, 3, 0, 1)).reshape(9, c_out, c_in)
    w_taps = jnp.pad(w_taps, ((0, 0), (0, c_out_pad - c_out), (0, 0))).astype(COMPUTE_DTYPE)
    b2 = jnp.pad(bias.reshape(c_out, 1), ((0, c_out_pad - c_out), (0, 0)))

    grid = (n, n_tiles)
    flops = 2 * 9 * c_in * c_out_pad * n * h_pad * w
    bytes_accessed = (x_halo.size * 2 + w_taps.size * 2 + b2.size * 4 + 4
                      + n * c_out_pad * h_pad * w * jnp.dtype(out_dtype).itemsize)

    out = pl.pallas_call(
        functools.partial(_fused_conv3x3_kernel, img_w=w),
        out_shape=jax.ShapeDtypeStruct((n, c_out_pad, h_pad * w), out_dtype),
        grid=grid,
        in_specs=[
            pl.BlockSpec(memory_space=pltpu.MemorySpace.SMEM),                     # 1/sigma
            pl.BlockSpec((None, None, c_in, s_slab), lambda i, t: (i, t, 0, 0)),   # row slab
            pl.BlockSpec((9, c_out_pad, c_in), lambda i, t: (0, 0, 0),
                         pipeline_mode=pl.Buffered(1)),                            # taps (resident)
            pl.BlockSpec((c_out_pad, 1), lambda i, t: (0, 0),
                         pipeline_mode=pl.Buffered(1)),                            # bias (resident)
        ],
        out_specs=pl.BlockSpec((None, c_out_pad, s_out), lambda i, t: (i, 0, t)),
        compiler_params=pltpu.CompilerParams(
            dimension_semantics=("parallel", "parallel"),
            vmem_limit_bytes=vmem_limit),
        cost_estimate=pl.CostEstimate(flops=int(flops), transcendentals=0,
                                      bytes_accessed=int(bytes_accessed)),
    )(inv_sigma, x_halo, w_taps, b2)

    # Output already lands as (N, C_out_pad, H_pad*W): slice only if padding exists
    # (no-op for the common c_out % 8 == 0, tile_h | H case), then a pure reshape.
    if c_out_pad != c_out or h_pad != h:
        out = out[:, :c_out, :h * w]
    y = out.reshape(n, c_out, h, w)
    return y, u_new[0, :c_out], v_new[0, :k]


# ----------------------------- reference (pure JAX) -----------------------------
def _l2n(t):
    return t / (jnp.linalg.norm(t) + EPS)


def _reference(x, w_bar, bias, u, v):
    c_out = w_bar.shape[0]
    w_mat = w_bar.reshape(c_out, -1)
    for _ in range(POWER_ITERATIONS):
        v = _l2n(w_mat.T @ u)
        u = _l2n(w_mat @ v)
    sigma = u @ (w_mat @ v)
    w_n = w_bar / sigma
    y = lax.conv_general_dilated(
        x, w_n, window_strides=(1, 1), padding="SAME",
        dimension_numbers=("NCHW", "OIHW", "NCHW"))
    y = y + bias.reshape(1, -1, 1, 1)
    return y, u, v


if __name__ == "__main__":
    key = jax.random.PRNGKey(0)
    k_x, k_w, k_b, k_u, k_v = jax.random.split(key, 5)

    N, C_IN, H, W = 2, 4, 16, 16
    C_OUT, KH, KW = 8, 3, 3

    x = jax.random.normal(k_x, (N, C_IN, H, W), dtype=jnp.float32)
    w_bar = 0.1 * jax.random.normal(k_w, (C_OUT, C_IN, KH, KW), dtype=jnp.float32)
    bias = 0.1 * jax.random.normal(k_b, (C_OUT,), dtype=jnp.float32)
    u0 = _l2n(jax.random.normal(k_u, (C_OUT,), dtype=jnp.float32))
    v0 = _l2n(jax.random.normal(k_v, (C_IN * KH * KW,), dtype=jnp.float32))

    y, u_new, v_new = spectral_norm_conv_forward(x, w_bar, bias, u0, v0)
    jax.block_until_ready((y, u_new, v_new))

    y_ref, u_ref, v_ref = _reference(x, w_bar, bias, u0, v0)
    # y tolerance accounts for the bf16 matmul inputs (f32 accumulation).
    assert jnp.allclose(y, y_ref, atol=5e-2, rtol=5e-2), "conv output mismatch"
    assert jnp.allclose(u_new, u_ref, atol=1e-5, rtol=1e-4), "u mismatch"
    assert jnp.allclose(v_new, v_ref, atol=1e-5, rtol=1e-4), "v mismatch"

    print("KERNEL_OK")
</pallas_src>

<mosaic_0001>
module attributes {stable_mosaic.version = 11 : i64} {
  func.func @_power_iter_kernel(%arg0: memref<8x128xf32, #tpu.memory_space<vmem>>, %arg1: memref<1x8xf32, #tpu.memory_space<vmem>>, %arg2: memref<1x128xf32, #tpu.memory_space<vmem>>, %arg3: memref<1x8xf32, #tpu.memory_space<vmem>>, %arg4: memref<1x128xf32, #tpu.memory_space<vmem>>, %arg5: memref<1x1xf32, #tpu.memory_space<vmem>>) attributes {dimension_semantics = [], scalar_prefetch = 0 : i64, scratch_operands = 0 : i64, tpu.core_type = #tpu.core_type<tc>} {
    %c0 = arith.constant 0 : index
    %c0_0 = arith.constant 0 : index
    %0 = vector.load %arg0[%c0, %c0_0] : memref<8x128xf32, #tpu.memory_space<vmem>>, vector<8x128xf32>
    %c0_1 = arith.constant 0 : index
    %c0_2 = arith.constant 0 : index
    %1 = vector.load %arg1[%c0_1, %c0_2] : memref<1x8xf32, #tpu.memory_space<vmem>>, vector<1x8xf32>
    %cst = arith.constant dense<0.000000e+00> : vector<1x128xf32>
    %2 = tpu.matmul %1, %0, %cst {dimension_numbers = #tpu.dot_dimension_numbers<[1], [0], [0], [1], [0, 0, 1, 1], [], []>} : vector<1x8xf32>, vector<8x128xf32>, vector<1x128xf32> -> vector<1x128xf32>
    %3 = arith.mulf %2, %2 : vector<1x128xf32>
    %4 = vector.shape_cast %3 : vector<1x128xf32> to vector<1x1x128xf32>
    %cst_3 = arith.constant dense<0.000000e+00> : vector<1xf32>
    %5 = vector.multi_reduction <add>, %4, %cst_3 [1, 2] : vector<1x1x128xf32> to vector<1xf32>
    %6 = vector.shape_cast %5 : vector<1xf32> to vector<1x1x1xf32>
    %7 = vector.extract %6[0, 0, 0] : f32 from vector<1x1x1xf32>
    %cst_4 = arith.constant 1.000000e-24 : f32
    %8 = arith.addf %7, %cst_4 : f32
    %9 = math.rsqrt %8 : f32
    %10 = vector.broadcast %9 : f32 to vector<1x128xf32>
    %11 = arith.mulf %2, %10 : vector<1x128xf32>
    %cst_5 = arith.constant dense<0.000000e+00> : vector<1x8xf32>
    %12 = tpu.matmul %11, %0, %cst_5 {dimension_numbers = #tpu.dot_dimension_numbers<[1], [1], [0], [0], [0, 0, 1, 0], [], []>} : vector<1x128xf32>, vector<8x128xf32>, vector<1x8xf32> -> vector<1x8xf32>
    %13 = arith.mulf %12, %12 : vector<1x8xf32>
    %14 = vector.shape_cast %13 : vector<1x8xf32> to vector<1x1x8xf32>
    %cst_6 = arith.constant dense<0.000000e+00> : vector<1xf32>
    %15 = vector.multi_reduction <add>, %14, %cst_6 [1, 2] : vector<1x1x8xf32> to vector<1xf32>
    %16 = vector.shape_cast %15 : vector<1xf32> to vector<1x1x1xf32>
    %17 = vector.extract %16[0, 0, 0] : f32 from vector<1x1x1xf32>
    %cst_7 = arith.constant 1.000000e-24 : f32
    %18 = arith.addf %17, %cst_7 : f32
    %19 = math.rsqrt %18 : f32
    %20 = vector.broadcast %19 : f32 to vector<1x8xf32>
    %21 = arith.mulf %12, %20 : vector<1x8xf32>
    %cst_8 = arith.constant dense<0.000000e+00> : vector<1x8xf32>
    %22 = tpu.matmul %11, %0, %cst_8 {dimension_numbers = #tpu.dot_dimension_numbers<[1], [1], [0], [0], [0, 0, 1, 0], [], []>} : vector<1x128xf32>, vector<8x128xf32>, vector<1x8xf32> -> vector<1x8xf32>
    %23 = arith.mulf %21, %22 : vector<1x8xf32>
    %24 = vector.shape_cast %23 : vector<1x8xf32> to vector<1x1x8xf32>
    %cst_9 = arith.constant dense<0.000000e+00> : vector<1xf32>
    %25 = vector.multi_reduction <add>, %24, %cst_9 [1, 2] : vector<1x1x8xf32> to vector<1xf32>
    %26 = vector.shape_cast %25 : vector<1xf32> to vector<1x1x1xf32>
    %27 = vector.extract %26[0, 0, 0] : f32 from vector<1x1x1xf32>
    %28 = vector.broadcast %27 : f32 to vector<1x1xf32>
    %29 = tpu.reciprocal %28 : vector<1x1xf32> -> vector<1x1xf32>
    %c0_10 = arith.constant 0 : index
    %c0_11 = arith.constant 0 : index
    %30 = vector.load %arg5[%c0_10, %c0_11] : memref<1x1xf32, #tpu.memory_space<vmem>>, vector<1x1xf32>
    tpu.vector_store %arg5[%c0_10, %c0_11], %29 {strides = array<i32>} : memref<1x1xf32, #tpu.memory_space<vmem>>, vector<1x1xf32>,
    %c0_12 = arith.constant 0 : index
    %c0_13 = arith.constant 0 : index
    %31 = vector.load %arg3[%c0_12, %c0_13] : memref<1x8xf32, #tpu.memory_space<vmem>>, vector<1x8xf32>
    tpu.vector_store %arg3[%c0_12, %c0_13], %21 {strides = array<i32>} : memref<1x8xf32, #tpu.memory_space<vmem>>, vector<1x8xf32>,
    %c0_14 = arith.constant 0 : index
    %c0_15 = arith.constant 0 : index
    %32 = vector.load %arg4[%c0_14, %c0_15] : memref<1x128xf32, #tpu.memory_space<vmem>>, vector<1x128xf32>
    tpu.vector_store %arg4[%c0_14, %c0_15], %11 {strides = array<i32>} : memref<1x128xf32, #tpu.memory_space<vmem>>, vector<1x128xf32>,
    return
  }
}

</mosaic_0001>

<bundles_post_ra>
// kernel: tpu_custom_call.1
= control target key start
LH: loop header
LB: loop body
LE: loop exit
PB: predicated region body
PF: predicated region fallthrough
CT: control target
= control target key end

     0   :  { %11 = vsyncpa [#allocation3], 0  ;;  %s493_s0 = inlined_call_operand.hbm [shape: f32[8,128], index: 0, kind: input, shape index: {}]   ;;  %s494_s1 = inlined_call_operand.vmem [shape: f32[1,8], index: 1, kind: input, shape index: {}]   ;;  %s495_s2 = inlined_call_operand.vmem [shape: f32[1,128], index: 2, kind: input, shape index: {}]   ;;  %s496_s3 = inlined_call_operand.hbm [shape: f32[1,8], index: 3, kind: output, shape index: {0}]   ;;  %s497_s4 = inlined_call_operand.hbm [shape: f32[1,128], index: 4, kind: output, shape index: {1}]   ;;  %s498_s5 = inlined_call_operand.hbm [shape: f32[1,1], index: 5, kind: output, shape index: {2}]  }
   0x1   :  { %12 = vsyncpa [#allocation4], 0 }
   0x2   :  { %13 = vsyncpa [#allocation7], 0  ;;  %s403_s18 = smov [#allocation2]   ;;  %s309_s22 = scalar_lea.hbm %s493_s0, 128 }
   0x3   :  { %s20_s19 = sshll.u32 %s403_s18, 4  ;;  %p310_p0 = scmp.ne.s32.totalorder %s493_s0, %s309_s22  ;;  %s21_s19 = int_to_ptr.vmem [resolvable:$true] %s20_s19 }
   0x4   :  { %p313_p1 = scmp.lt.u32.totalorder %s309_s22, %s493_s0 }
   0x6   :  { %p315_p2 = pnand %p313_p1, %p310_p0 }
   0x8   :  { %318 = shalt.err (!%p315_p2)
}
   0x9   :  { %s319_s26 = scalar_lea.vmem %s21_s19, 128  ;;  %p324_p4 = scmp.lt.s32.totalorder %s21_s19, %s21_s19 }
   0xa   :  { %p320_p3 = scmp.ne.s32.totalorder %s21_s19, %s319_s26  ;;  %p325_p5 = scmp.lt.s32.totalorder %s319_s26, %s319_s26 }
   0xc   :  { %p326_p6 = por %p325_p5, %p324_p4 }
   0xe   :  { %p327_p7 = pnand %p326_p6, %p320_p3 }
  0x10   :  { %330 = shalt.err (!%p327_p7)
}
  0x11   :  { %23 = dma.hbm_to_vmem [thread:$0]  %s493_s0, 128, %s21_s19, [#allocation3]  }
  0x12   :  { %397 = dma.done.wait [#allocation3], 128  }
  0x13   :  { %398 = vsyncadd [#allocation3], 4294967168  ;;  %v404_v0 = vmov 0.0   ;;  %vm405_vm0 = vmmov 0   ;;  %vm33_vm1 = vcmask 64512   ;;  %v31_v1 = vld [vmem:[#allocation2] sm:$0xff] }
  0x14   :  { %277 = vmatprep.subr.mxu0 %v404_v0  ;;  %279 = vmatprep.mubr.msk.f32.mxu0 %vm405_vm0, %v404_v0  ;;  %v32_v2 = vld [vmem:[%s494_s1] sm:$0x1]  ;;  %vm108_vm2 = vcmask 1040384   ;;  %vm196_vm3 = vcmask 57344   ;;  %s406_s10 = smov [#allocation6]   ;;  %s407_s12 = smov [#allocation5]  }
  0x15   :  { %282 = vmatprep.subr.mxu1 %v404_v0  ;;  %284 = vmatprep.mubr.msk.f32.mxu1 %vm405_vm0, %v404_v0  ;;  %s246_s11 = sshll.u32 %s406_s10, 4  ;;  %s236_s13 = sshll.u32 %s407_s12, 4  ;;  %s247_s11 = int_to_ptr.vmem [resolvable:$true] %s246_s11  ;;  %s237_s13 = int_to_ptr.vmem [resolvable:$true] %s236_s13 }
  0x16   :  { %278 = vmatpush3.msra.mxu0 %v31_v1  ;;  %283 = vmatpush3.xpose.msra.mxu1 %v31_v1  ;;  %s331_s14 = scalar_lea.vmem %s247_s11, 16  ;;  %s335_s15 = scalar_lea.vmem %s247_s11, 32 }
  0x17   :  { %280 = vmatmul.mubr.msk.f32.vlgmr.msra.gmra.mrb[0].mxu0 %vm33_vm1, %v32_v2  ;;  %p332_p8 = scmp.ne.s32.totalorder %s247_s11, %s331_s14  ;;  %p336_p9 = scmp.lt.s32.totalorder %s247_s11, %s247_s11 }
  0x18   :  { %p337_p10 = scmp.lt.s32.totalorder %s335_s15, %s331_s14 }
  0x1a   :  { %p338_p11 = por %p337_p10, %p336_p9 }
  0x1c   :  { %p339_p12 = pnand %p338_p11, %p332_p8 }
  0xea   :  { %v103_v3 = vpop.f32.mrb[0].mxu0 }
  0xeb   :  { %v281_v4 = vpop.f32.mrb[1].mxu0  ;;  %v107_v5 = vmul.f32 %v103_v3, %v103_v3 }
  0xed   :  { %v109_v6 = vsel %vm108_vm2, %v107_v5, 0.0 }
  0xee   :  { %110 = vadd.xlane.f32.xlu0 %v109_v6 }
 0x17b   :  { %v111_v7 = vpop.xlane.xlu0 %110 }
 0x17c   :  { %v112_v8 = vrot.slane %v111_v7, 4 }
 0x17e   :  { %v113_v9 = vadd.f32 %v112_v8, %v111_v7 }
 0x180   :  { %v114_v10 = vrot.slane %v113_v9, 2 }
 0x182   :  { %v115_v11 = vadd.f32 %v114_v10, %v113_v9 }
 0x184   :  { %v116_v12 = vrot.slane %v115_v11, 1 }
 0x186   :  { %v117_v13 = vadd.f32 %v116_v12, %v115_v11 }
 0x188   :  { %287 = vpush %v117_v13 }
 0x1b9   :  { %s288_s0 = spop %287 }
 0x1ba   :  { %s119_s6 = sadd.f32 1e-24, %s288_s0 }
 0x1bc   :  { %v120_v14 = vstv %s119_s6 }
 0x1bd   :  { %303 = vrsqrt.f32 %v120_v14 }
 0x1c7   :  { %v304_v15 = vpop.eup %303 }
 0x1c8   :  { %289 = vpush %v304_v15 }
 0x1f9   :  { %s290_s1 = spop %289 }
 0x1fa   :  { %v123_v16 = vstv %s290_s1 }
 0x1fb   :  { %v124_v17 = vmul.f32 %v123_v16, %v103_v3 }
 0x1fd   :  { %229 = vst [vmem:[#allocation6] sm:$0x1] %v124_v17  ;;  %285 = vmatmul.mubr.f32.vlgmr.msra.gmra.mrb[0].mxu1 %v124_v17 }
 0x2d0   :  { %v191_v18 = vpop.f32.mrb[0].mxu1 }
 0x2d1   :  { %v286_v19 = vpop.f32.mrb[1].mxu1  ;;  %v195_v20 = vmul.f32 %v191_v18, %v191_v18 }
 0x2d3   :  { %v197_v21 = vsel %vm196_vm3, %v195_v20, 0.0 }
 0x2d4   :  { %198 = vadd.xlane.f32.xlu0 %v197_v21 }
 0x361   :  { %v199_v22 = vpop.xlane.xlu0 %198 }
 0x362   :  { %v200_v23 = vrot.slane %v199_v22, 4 }
 0x364   :  { %v201_v24 = vadd.f32 %v200_v23, %v199_v22 }
 0x366   :  { %v202_v25 = vrot.slane %v201_v24, 2 }
 0x368   :  { %v203_v26 = vadd.f32 %v202_v25, %v201_v24 }
 0x36a   :  { %v204_v27 = vrot.slane %v203_v26, 1 }
 0x36c   :  { %v205_v28 = vadd.f32 %v204_v27, %v203_v26 }
 0x36e   :  { %291 = vpush %v205_v28 }
 0x39f   :  { %s292_s7 = spop %291 }
 0x3a0   :  { %s207_s8 = sadd.f32 1e-24, %s292_s7 }
 0x3a2   :  { %v208_v29 = vstv %s207_s8 }
 0x3a3   :  { %305 = vrsqrt.f32 %v208_v29 }
 0x3ad   :  { %v306_v30 = vpop.eup %305 }
 0x3ae   :  { %293 = vpush %v306_v30 }
 0x3df   :  { %s294_s9 = spop %293 }
 0x3e0   :  { %v211_v31 = vstv %s294_s9 }
 0x3e1   :  { %v212_v32 = vmul.f32 %v211_v31, %v191_v18 }
 0x3e3   :  { %228 = vst.msk [vmem:[#allocation5] sm:$0x1] %vm196_vm3, %v212_v32  ;;  %v213_v33 = vmul.f32 %v212_v32, %v191_v18 }
 0x3e5   :  { %v214_v34 = vsel %vm196_vm3, %v213_v33, 0.0 }
 0x3e6   :  { %215 = vadd.xlane.f32.xlu1 %v214_v34 }
 0x3e7   :  { %342 = shalt.err (!%p339_p12)
}
 0x3e8   :  { %s343_s18 = scalar_lea.hbm %s497_s4, 16 }
 0x3e9   :  { %p344_p13 = scmp.ne.s32.totalorder %s497_s4, %s343_s18  ;;  %p347_p0 = scmp.lt.u32.totalorder %s343_s18, %s497_s4 }
 0x3eb   :  { %p349_p1 = pnand %p347_p0, %p344_p13 }
 0x3ed   :  { %352 = shalt.err (!%p349_p1)
}
 0x3ee   :  { %249 = dma.vmem_to_hbm [thread:$0]  %s247_s11, 16, %s497_s4, [#allocation7]  }
 0x3ef   :  { %s353_s24 = scalar_lea.vmem %s237_s13, 16  ;;  %s357_s25 = scalar_lea.vmem %s237_s13, 32 }
 0x3f0   :  { %p354_p2 = scmp.ne.s32.totalorder %s237_s13, %s353_s24  ;;  %p358_p3 = scmp.lt.s32.totalorder %s237_s13, %s237_s13 }
 0x3f1   :  { %p359_p4 = scmp.lt.s32.totalorder %s357_s25, %s353_s24 }
 0x3f3   :  { %p360_p5 = por %p359_p4, %p358_p3 }
 0x3f5   :  { %p361_p6 = pnand %p360_p5, %p354_p2 }
 0x3f7   :  { %364 = shalt.err (!%p361_p6)
}
 0x3f8   :  { %s365_s28 = scalar_lea.hbm %s496_s3, 16 }
 0x3f9   :  { %p366_p7 = scmp.ne.s32.totalorder %s496_s3, %s365_s28  ;;  %p369_p8 = scmp.lt.u32.totalorder %s365_s28, %s496_s3 }
 0x3fb   :  { %p371_p9 = pnand %p369_p8, %p366_p7 }
 0x3fd   :  { %374 = shalt.err (!%p371_p9)
}
 0x3fe   :  { %239 = dma.vmem_to_hbm [thread:$0]  %s237_s13, 16, %s496_s3, [#allocation4]   ;;  %vm226_vm4 = vcmask 0  }
 0x3ff   :  { %s408_s8 = smov [#allocation8]  }
 0x400   :  { %s256_s9 = sshll.u32 %s408_s8, 4  ;;  %s257_s9 = int_to_ptr.vmem [resolvable:$true] %s256_s9 }
 0x401   :  { %s375_s10 = scalar_lea.vmem %s257_s9, 16  ;;  %s379_s3 = scalar_lea.vmem %s257_s9, 32 }
 0x402   :  { %p376_p10 = scmp.ne.s32.totalorder %s257_s9, %s375_s10  ;;  %p380_p11 = scmp.lt.s32.totalorder %s257_s9, %s257_s9 }
 0x403   :  { %p381_p12 = scmp.lt.s32.totalorder %s379_s3, %s375_s10 }
 0x405   :  { %p382_p13 = por %p381_p12, %p380_p11 }
 0x407   :  { %p383_p0 = pnand %p382_p13, %p376_p10 }
 0x473   :  { %v216_v35 = vpop.xlane.xlu1 %215 }
 0x474   :  { %v217_v36 = vrot.slane %v216_v35, 4 }
 0x476   :  { %v218_v37 = vadd.f32 %v217_v36, %v216_v35 }
 0x478   :  { %v219_v38 = vrot.slane %v218_v37, 2 }
 0x47a   :  { %v220_v39 = vadd.f32 %v219_v38, %v218_v37 }
 0x47c   :  { %v221_v40 = vrot.slane %v220_v39, 1 }
 0x47e   :  { %v222_v41 = vadd.f32 %v221_v40, %v220_v39 }
 0x480   :  { %295 = vpush %v222_v41 }
 0x4b1   :  { %s296_s7 = spop %295 }
 0x4b2   :  { %v224_v42 = vstv %s296_s7 }
 0x4b3   :  { %307 = vrcp.f32 %v224_v42 }
 0x4bd   :  { %v308_v43 = vpop.eup %307 }
 0x4be   :  { %227 = vst.msk [vmem:[#allocation8] sm:$0x1] %vm226_vm4, %v308_v43 }
 0x4bf   :  { %386 = shalt.err (!%p383_p0)
}
 0x4c0   :  { %s387_s13 = scalar_lea.hbm %s498_s5, 16 }
 0x4c1   :  { %p388_p1 = scmp.ne.s32.totalorder %s498_s5, %s387_s13  ;;  %p391_p2 = scmp.lt.u32.totalorder %s387_s13, %s498_s5 }
 0x4c3   :  { %p393_p3 = pnand %p391_p2, %p388_p1 }
 0x4c5   :  { %396 = shalt.err (!%p393_p3)
}
 0x4c6   :  { %259 = dma.vmem_to_hbm [thread:$0]  %s257_s9, 16, %s498_s5, [#allocation7]  }
 0x4c7   :  { %399 = dma.done.wait [#allocation4], 16  }
 0x4c8   :  { %400 = vsyncadd [#allocation4], 4294967280 }
 0x4c9   :  { %401 = dma.done.wait [#allocation7], 32  }
 0x4ca   :  { %402 = vsyncadd [#allocation7], 4294967264 }
 0x4cb   :  { %269 = vsyncpa [#allocation3], 1 }
 0x4cc   :  { %270 = vsyncpa [#allocation4], 1 }
 0x4cd   :  { %271 = vsyncpa [#allocation7], 1 }

</bundles_post_ra>
